<compile_context>
chip_gen: v6e
topology: v6e:2x2x1
jax: 0.10.0
libtpu: 0.0.40
codegen_flags: <defaults>
</compile_context>

<pallas_src>
import functools

import jax
import jax.numpy as jnp
from jax.experimental import pallas as pl
from jax.experimental.pallas import tpu as pltpu

DROPOUT_P = 0.4  # module hard-codes self.dropout = 0.4

_MAX_BT = 512    # sublane-axis tile cap (multiple of 16)
_MAX_FT = 4096   # lane-axis tile cap (multiple of 128)


def _locked_dropout_kernel(mask_ref, x_ref, o_ref):
    """mask_ref: (1, Ft) pre-scaled mask; x_ref/o_ref: (Bt, Ft) tile.

    The mask broadcasts over the batch (sublane) axis -> "locked" dropout.
    """
    o_ref[...] = x_ref[...] * mask_ref[...]


def _choose_tiles(B, F, dtype):
    """Pick tiles satisfying the (8, 128) rule, the VMEM budget, and >=2 steps."""
    sub_align = 16 if jnp.dtype(dtype).itemsize == 2 else 8

    Bt = B if B <= _MAX_BT else (_MAX_BT // sub_align) * sub_align
    Ft = F if F <= _MAX_FT else _MAX_FT  # cap is a multiple of 128

    # If everything would fit in a single block, split the lane axis so the
    # grid has at least 2 steps (keeps both v7x TensorCores busy).
    if Bt == B and Ft == F and F >= 256 and F % 128 == 0:
        Ft = max(128, ((F // 2) // 128) * 128)

    return Bt, Ft


@functools.partial(jax.jit, static_argnames=("p", "training"))
def locked_dropout(x, key, *, p=DROPOUT_P, training=True):
    """x: padded sequences (B, T, H); key: jax PRNG key; returns same shape/dtype."""
    if not training or p == 0.0:
        return x

    B, T, H = x.shape
    F = T * H
    keep_prob = 1.0 - p

    # One locked mask of shape (1, T, H) == (1, F); 1/(1-p) scale folded in.
    keep = jax.random.uniform(key, (1, F), dtype=jnp.float32) < jnp.float32(keep_prob)
    mask = jnp.where(keep, jnp.float32(1.0 / keep_prob), jnp.float32(0.0)).astype(x.dtype)

    # Lane-dense 2D view: last dim T*H maps onto the 128-wide lane axis.
    x2 = x.reshape(B, F)
    Bt, Ft = _choose_tiles(B, F, x.dtype)

    out2 = pl.pallas_call(
        _locked_dropout_kernel,
        out_shape=jax.ShapeDtypeStruct((B, F), x.dtype),
        # Batch innermost: the mask block index is constant over the inner axis.
        grid=(pl.cdiv(F, Ft), pl.cdiv(B, Bt)),
        in_specs=[
            pl.BlockSpec((1, Ft), lambda f, b: (0, f)),    # shared, locked mask tile
            pl.BlockSpec((Bt, Ft), lambda f, b: (b, f)),   # x tile
        ],
        out_specs=pl.BlockSpec((Bt, Ft), lambda f, b: (b, f)),
        compiler_params=pltpu.CompilerParams(
            dimension_semantics=("parallel", "parallel"),
            vmem_limit_bytes=48 << 20,
        ),
    )(mask, x2)

    return out2.reshape(B, T, H)


if __name__ == "__main__":
    key = jax.random.PRNGKey(0)
    data_key, mask_key = jax.random.split(key)

    B, T, H = 2, 8, 32                      # batch, max seq len, hidden
    lengths = jnp.array([8, 5], dtype=jnp.int32)

    # Padded batch (what pad_packed_sequence would produce): zeros past length.
    x = jax.random.normal(data_key, (B, T, H), dtype=jnp.float32)
    valid = (jnp.arange(T)[None, :, None] < lengths[:, None, None]).astype(x.dtype)
    x = x * valid

    out = locked_dropout(x, mask_key, training=True)
    out = jax.block_until_ready(out)

    # sanity: shape/dtype preserved
    assert out.shape == x.shape and out.dtype == x.dtype
    # padded positions stay zero
    assert bool(jnp.all(out * (1.0 - valid) == 0.0))
    # every output element is either dropped (0) or x scaled by 1/(1-p)
    keep_prob = 1.0 - DROPOUT_P
    ok = (out == 0.0) | jnp.isclose(out, x / keep_prob, rtol=1e-5, atol=1e-6)
    assert bool(jnp.all(ok))
    # the mask is "locked": identical across the batch axis.  Where both rows
    # are valid and x != 0, the drop pattern must agree between batch items.
    kept = jnp.abs(out) > 0.0
    both_valid = (valid[0] * valid[1] * (jnp.abs(x[0]) > 0) * (jnp.abs(x[1]) > 0)) > 0
    assert bool(jnp.all(jnp.where(both_valid, kept[0] == kept[1], True)))
    # eval mode is the identity (value equality; jit may return a fresh Array)
    out_eval = jax.block_until_ready(locked_dropout(x, mask_key, training=False))
    assert bool(jnp.all(out_eval == x))

    print("KERNEL_OK")
</pallas_src>

<mosaic_0001>
module attributes {stable_mosaic.version = 11 : i64} {
  func.func @_locked_dropout_kernel(%arg0: i32, %arg1: i32, %arg2: memref<1x128xf32, #tpu.memory_space<vmem>>, %arg3: memref<2x128xf32, #tpu.memory_space<vmem>>, %arg4: memref<2x128xf32, #tpu.memory_space<vmem>>) attributes {dimension_semantics = [#tpu.dimension_semantics<parallel>, #tpu.dimension_semantics<parallel>], iteration_bounds = array<i64: 2, 1>, scalar_prefetch = 0 : i64, scratch_operands = 0 : i64, tpu.core_type = #tpu.core_type<tc>, window_params = [{transform_indices = @transform_0, window_bounds = array<i64: 1, 128>}, {transform_indices = @transform_1, window_bounds = array<i64: 2, 128>}, {transform_indices = @transform_2, window_bounds = array<i64: 2, 128>}]} {
    %c0 = arith.constant 0 : index
    %c0_0 = arith.constant 0 : index
    %0 = vector.load %arg3[%c0, %c0_0] : memref<2x128xf32, #tpu.memory_space<vmem>>, vector<2x128xf32>
    %c0_1 = arith.constant 0 : index
    %c0_2 = arith.constant 0 : index
    %1 = vector.load %arg2[%c0_1, %c0_2] : memref<1x128xf32, #tpu.memory_space<vmem>>, vector<1x128xf32>
    %2 = vector.broadcast %1 : vector<1x128xf32> to vector<2x128xf32>
    %3 = arith.mulf %0, %2 : vector<2x128xf32>
    %c0_3 = arith.constant 0 : index
    %c0_4 = arith.constant 0 : index
    %4 = vector.load %arg4[%c0_3, %c0_4] : memref<2x128xf32, #tpu.memory_space<vmem>>, vector<2x128xf32>
    tpu.vector_store %arg4[%c0_3, %c0_4], %3 {strides = array<i32>} : memref<2x128xf32, #tpu.memory_space<vmem>>, vector<2x128xf32>,
    return
  }
  func.func @transform_0(%arg0: i32, %arg1: i32) -> (i32, i32) {
    %c0_i32 = arith.constant 0 : i32
    %c0_i32_0 = arith.constant 0 : i32
    return %c0_i32, %arg0 : i32, i32
  }
  func.func @transform_1(%arg0: i32, %arg1: i32) -> (i32, i32) {
    %c0_i32 = arith.constant 0 : i32
    return %arg1, %arg0 : i32, i32
  }
  func.func @transform_2(%arg0: i32, %arg1: i32) -> (i32, i32) {
    %c0_i32 = arith.constant 0 : i32
    return %arg1, %arg0 : i32, i32
  }
}

</mosaic_0001>

<bundles_post_ra>
// kernel: locked_dropout.1
= control target key start
LH: loop header
LB: loop body
LE: loop exit
PB: predicated region body
PF: predicated region fallthrough
CT: control target
= control target key end

     0   :  { %s364_s9 = smov 0   ;;  %s366_s10 = smov 0   ;;  %s383_s0 = inlined_call_operand.vmem [shape: f32[1,256], index: 0, kind: input, shape index: {}]   ;;  %s384_s1 = inlined_call_operand.vmem [shape: f32[2,256], index: 1, kind: input, shape index: {}]   ;;  %s385_s2 = inlined_call_operand.vmem [shape: f32[2,256], index: 2, kind: output, shape index: {}]  }
   0x1   :  { %s345_s11 = smov 0  }
   0x2 LB: > { %s24_s12 = sadd.s32 1, %s343_s10  ;;  %p295_p0 = scmp.ge.s32.totalorder %s347_s11, 1  ;;  %s347_s11 = sphi %s345_s11, %s12_s11   ;;  %s343_s10 = sphi %s366_s10, %s387_s10   ;;  %s339_s9 = sphi %s364_s9, %s386_s9  }
   0x3   : > { %p26_p1 = scmp.ge.s32.totalorder %s24_s12, 2  ;;  %p139_p2 = scmp.lt.s32.totalorder %s347_s11, 3 }
   0x5   : > { %s389_s12 = smov (%p26_p1, %s24_s12), 0  ;;  %p140_p3 = pnand %p295_p0, %p139_p2 }
   0x6   : > { %p170_p4 = scmp.lt.s32.totalorder (!%p140_p3), %s339_s9, 1 }
   0x7   : > { %143 = sbr.rel (%p140_p3) target bundleno = 19 (0x13), region = 28 }
   0xc   : > { %s391_s9 = smov (!%p170_p4, %s339_s9), 1 }
   0xd   : > { %s172_s15 = scalar_lea.vmem %s383_s0, %s391_s9  ;;  %s296_s16 = sshll.u32 %s391_s9, 1 }
   0xe   : > { %s180_s19 = scalar_lea.vmem %s384_s1, %s296_s16  ;;  %v298_v0 = vld [vmem:[%s172_s15] ss:$0 sm:$0xff]  ;;  %s188_s22 = scalar_lea.vmem %s385_s2, %s296_s16 }
   0xf   : > { %v189_v1 = vld [vmem:[%s180_s19] sm:$0x3] }
  0x10   : > { %v197_v2 = vmul.f32 %v298_v0, %v189_v1 }
  0x12   : > { %198 = vst [vmem:[%s188_s22] sm:$0x3] %v197_v2 }
  0x13 PF: > { %s12_s11 = sadd.s32 1, %s347_s11   ;;  %s386_s9 = smov %s343_s10 }
  0x14   : > { %p9_p5 = scmp.ge.s32.totalorder %s12_s11, 4   ;;  %s387_s10 = smov %s389_s12 }
  0x16   :  { %11 = sbr.rel (!%p9_p5) target bundleno = 2 (0x2), region = 61 }

</bundles_post_ra>
